<compile_context>
chip_gen: v5e
topology: v5e:2x2
jax: 0.10.0
libtpu: 0.0.40
codegen_flags: <defaults>
</compile_context>

<pallas_src>
import jax
import jax.numpy as jnp
import numpy as np
from jax.experimental import pallas as pl
from jax.experimental.pallas import tpu as pltpu


def _round_up(x, m):
    return ((x + m - 1) // m) * m


def _per_sample_ce_kernel(logits_ref, labels_ref, ce_ref):
    """logits_ref: (C, TILE_B) any float dtype; labels_ref: (1, TILE_B) int32;
    ce_ref: (1, TILE_B) f32 per-sample cross-entropy."""
    C, _ = logits_ref.shape
    x = logits_ref[...].astype(jnp.float32)          # widen in-kernel (C, TB)
    lab = labels_ref[...]                            # (1, TB) int32

    # running max over classes — statically unrolled, pure VPU, lane-dense rows
    m = x[0:1, :]
    for c in range(1, C):
        m = jnp.maximum(m, x[c:c + 1, :])

    # exp-sum and logit-at-label (select instead of gather/one-hot reduce)
    s = jnp.zeros_like(m)
    x_lab = jnp.zeros_like(m)
    for c in range(C):
        row = x[c:c + 1, :]
        s = s + jnp.exp(row - m)
        x_lab = jnp.where(lab == c, row, x_lab)

    # ce = logsumexp(x) - x[label]
    ce_ref[...] = jnp.log(s) + m - x_lab


def focal_loss_tpu(logits, labels, *, gamma=0.0, weight=None, reduction='mean',
                   tile_b=8192):
    """logits: (B, C) float (any float dtype), labels: (B,) int.
    Returns focal loss with the same semantics as the PyTorch FocalLoss module."""
    assert gamma >= 0
    # TODO(synk): per-class `weight` not implemented (module default is weight=None).
    assert weight is None

    B, C = logits.shape

    # Tile the batch on the lane axis; TILE_B is a multiple of 128 (<= tile_b).
    tb = min(int(tile_b), _round_up(B, 128))
    B_pad = _round_up(B, tb)
    grid = (B_pad // tb,)

    # Re-layout: classes on sublanes, batch on lanes. Keep original dtype for the DMA.
    logits_t = jnp.transpose(logits)                                  # (C, B)
    labels_2d = labels.astype(jnp.int32).reshape(1, B)                # (1, B)
    if B_pad != B:
        logits_t = jnp.pad(logits_t, ((0, 0), (0, B_pad - B)))
        labels_2d = jnp.pad(labels_2d, ((0, 0), (0, B_pad - B)))

    ce_all = pl.pallas_call(
        _per_sample_ce_kernel,
        out_shape=jax.ShapeDtypeStruct((1, B_pad), jnp.float32),
        grid_spec=pltpu.PrefetchScalarGridSpec(
            num_scalar_prefetch=0,
            grid=grid,
            in_specs=[
                pl.BlockSpec((C, tb), lambda i: (0, i)),   # logits tile (C, TILE_B)
                pl.BlockSpec((1, tb), lambda i: (0, i)),   # labels tile (1, TILE_B)
            ],
            out_specs=pl.BlockSpec((1, tb), lambda i: (0, i)),  # lane-dense output
        ),
        compiler_params=pltpu.CompilerParams(
            dimension_semantics=("parallel",),
        ),
    )(logits_t, labels_2d)

    ce = ce_all[0, :B]                                                # (B,) per-sample CE

    if reduction == 'mean':
        ce_red = jnp.mean(ce)
    elif reduction == 'sum':
        ce_red = jnp.sum(ce)
    elif reduction == 'none':
        ce_red = ce
    else:
        raise ValueError(f"unknown reduction: {reduction}")

    # focal transform (applied to the reduced value, exactly as in the PyTorch module)
    p = jnp.exp(-ce_red)
    return (1.0 - p) ** gamma * ce_red


def _reference(logits, labels, gamma, reduction):
    """Pure-JAX reference matching the PyTorch FocalLoss (weight=None)."""
    logits = logits.astype(jnp.float32)
    logp = jax.nn.log_softmax(logits, axis=1)
    ce = -jnp.take_along_axis(logp, labels[:, None].astype(jnp.int32), axis=1)[:, 0]
    if reduction == 'mean':
        ce = jnp.mean(ce)
    elif reduction == 'sum':
        ce = jnp.sum(ce)
    p = jnp.exp(-ce)
    return (1.0 - p) ** gamma * ce


if __name__ == "__main__":
    B, C = 64, 10
    key = jax.random.PRNGKey(0)
    k1, k2 = jax.random.split(key)
    logits = jax.random.normal(k1, (B, C), dtype=jnp.float32)
    labels = jax.random.randint(k2, (B,), 0, C, dtype=jnp.int32)

    # module defaults: weight=None, gamma=0.0, reduction='mean'
    out_default = focal_loss_tpu(logits, labels, gamma=0.0, reduction='mean')
    jax.block_until_ready(out_default)

    # non-default gamma / reduction exercise the focal term
    out_g2 = focal_loss_tpu(logits, labels, gamma=2.0, reduction='mean')
    out_none = focal_loss_tpu(logits, labels, gamma=2.0, reduction='none')
    # bf16 logits exercise the in-kernel widen
    out_bf16 = focal_loss_tpu(logits.astype(jnp.bfloat16), labels, gamma=0.0,
                              reduction='mean')
    jax.block_until_ready((out_g2, out_none, out_bf16))

    ref_default = _reference(logits, labels, 0.0, 'mean')
    ref_g2 = _reference(logits, labels, 2.0, 'mean')
    ref_none = _reference(logits, labels, 2.0, 'none')
    ref_bf16 = _reference(logits.astype(jnp.bfloat16), labels, 0.0, 'mean')

    np.testing.assert_allclose(np.asarray(out_default), np.asarray(ref_default),
                               rtol=1e-5, atol=1e-5)
    np.testing.assert_allclose(np.asarray(out_g2), np.asarray(ref_g2),
                               rtol=1e-5, atol=1e-5)
    np.testing.assert_allclose(np.asarray(out_none), np.asarray(ref_none),
                               rtol=1e-5, atol=1e-5)
    np.testing.assert_allclose(np.asarray(out_bf16), np.asarray(ref_bf16),
                               rtol=1e-4, atol=1e-4)

    print("KERNEL_OK")
</pallas_src>

<mosaic_0001>
module attributes {stable_mosaic.version = 11 : i64} {
  func.func @_per_sample_ce_kernel(%arg0: i32, %arg1: memref<10x128xf32, #tpu.memory_space<vmem>>, %arg2: memref<1x128xi32, #tpu.memory_space<vmem>>, %arg3: memref<1x128xf32, #tpu.memory_space<vmem>>) attributes {dimension_semantics = [#tpu.dimension_semantics<parallel>], iteration_bounds = array<i64: 1>, scalar_prefetch = 0 : i64, scratch_operands = 0 : i64, tpu.core_type = #tpu.core_type<tc>, window_params = [{transform_indices = @transform_0, window_bounds = array<i64: 10, 128>}, {transform_indices = @transform_1, window_bounds = array<i64: 1, 128>}, {transform_indices = @transform_2, window_bounds = array<i64: 1, 128>}]} {
    %c0 = arith.constant 0 : index
    %c0_0 = arith.constant 0 : index
    %0 = vector.load %arg1[%c0, %c0_0] : memref<10x128xf32, #tpu.memory_space<vmem>>, vector<10x128xf32>
    %c0_1 = arith.constant 0 : index
    %c0_2 = arith.constant 0 : index
    %1 = vector.load %arg2[%c0_1, %c0_2] : memref<1x128xi32, #tpu.memory_space<vmem>>, vector<1x128xi32>
    %2 = vector.extract_strided_slice %0 {offsets = [0, 0], sizes = [1, 128], strides = [1, 1]} : vector<10x128xf32> to vector<1x128xf32>
    %3 = vector.extract_strided_slice %0 {offsets = [1, 0], sizes = [1, 128], strides = [1, 1]} : vector<10x128xf32> to vector<1x128xf32>
    %4 = arith.maximumf %2, %3 : vector<1x128xf32>
    %5 = vector.extract_strided_slice %0 {offsets = [2, 0], sizes = [1, 128], strides = [1, 1]} : vector<10x128xf32> to vector<1x128xf32>
    %6 = arith.maximumf %4, %5 : vector<1x128xf32>
    %7 = vector.extract_strided_slice %0 {offsets = [3, 0], sizes = [1, 128], strides = [1, 1]} : vector<10x128xf32> to vector<1x128xf32>
    %8 = arith.maximumf %6, %7 : vector<1x128xf32>
    %9 = vector.extract_strided_slice %0 {offsets = [4, 0], sizes = [1, 128], strides = [1, 1]} : vector<10x128xf32> to vector<1x128xf32>
    %10 = arith.maximumf %8, %9 : vector<1x128xf32>
    %11 = vector.extract_strided_slice %0 {offsets = [5, 0], sizes = [1, 128], strides = [1, 1]} : vector<10x128xf32> to vector<1x128xf32>
    %12 = arith.maximumf %10, %11 : vector<1x128xf32>
    %13 = vector.extract_strided_slice %0 {offsets = [6, 0], sizes = [1, 128], strides = [1, 1]} : vector<10x128xf32> to vector<1x128xf32>
    %14 = arith.maximumf %12, %13 : vector<1x128xf32>
    %15 = vector.extract_strided_slice %0 {offsets = [7, 0], sizes = [1, 128], strides = [1, 1]} : vector<10x128xf32> to vector<1x128xf32>
    %16 = arith.maximumf %14, %15 : vector<1x128xf32>
    %17 = vector.extract_strided_slice %0 {offsets = [8, 0], sizes = [1, 128], strides = [1, 1]} : vector<10x128xf32> to vector<1x128xf32>
    %18 = arith.maximumf %16, %17 : vector<1x128xf32>
    %19 = vector.extract_strided_slice %0 {offsets = [9, 0], sizes = [1, 128], strides = [1, 1]} : vector<10x128xf32> to vector<1x128xf32>
    %20 = arith.maximumf %18, %19 : vector<1x128xf32>
    %cst = arith.constant 0.000000e+00 : f32
    %21 = vector.broadcast %cst : f32 to vector<1x128xf32>
    %cst_3 = arith.constant 0.000000e+00 : f32
    %22 = vector.broadcast %cst_3 : f32 to vector<1x128xf32>
    %23 = vector.extract_strided_slice %0 {offsets = [0, 0], sizes = [1, 128], strides = [1, 1]} : vector<10x128xf32> to vector<1x128xf32>
    %24 = arith.subf %23, %20 : vector<1x128xf32>
    %25 = math.exp %24 : vector<1x128xf32>
    %26 = arith.addf %21, %25 : vector<1x128xf32>
    %c0_i32 = arith.constant 0 : i32
    %27 = vector.broadcast %c0_i32 : i32 to vector<1x128xi32>
    %28 = arith.cmpi eq, %1, %27 : vector<1x128xi32>
    %29 = arith.select %28, %23, %22 : vector<1x128xi1>, vector<1x128xf32>
    %30 = vector.extract_strided_slice %0 {offsets = [1, 0], sizes = [1, 128], strides = [1, 1]} : vector<10x128xf32> to vector<1x128xf32>
    %31 = arith.subf %30, %20 : vector<1x128xf32>
    %32 = math.exp %31 : vector<1x128xf32>
    %33 = arith.addf %26, %32 : vector<1x128xf32>
    %c1_i32 = arith.constant 1 : i32
    %34 = vector.broadcast %c1_i32 : i32 to vector<1x128xi32>
    %35 = arith.cmpi eq, %1, %34 : vector<1x128xi32>
    %36 = arith.select %35, %30, %29 : vector<1x128xi1>, vector<1x128xf32>
    %37 = vector.extract_strided_slice %0 {offsets = [2, 0], sizes = [1, 128], strides = [1, 1]} : vector<10x128xf32> to vector<1x128xf32>
    %38 = arith.subf %37, %20 : vector<1x128xf32>
    %39 = math.exp %38 : vector<1x128xf32>
    %40 = arith.addf %33, %39 : vector<1x128xf32>
    %c2_i32 = arith.constant 2 : i32
    %41 = vector.broadcast %c2_i32 : i32 to vector<1x128xi32>
    %42 = arith.cmpi eq, %1, %41 : vector<1x128xi32>
    %43 = arith.select %42, %37, %36 : vector<1x128xi1>, vector<1x128xf32>
    %44 = vector.extract_strided_slice %0 {offsets = [3, 0], sizes = [1, 128], strides = [1, 1]} : vector<10x128xf32> to vector<1x128xf32>
    %45 = arith.subf %44, %20 : vector<1x128xf32>
    %46 = math.exp %45 : vector<1x128xf32>
    %47 = arith.addf %40, %46 : vector<1x128xf32>
    %c3_i32 = arith.constant 3 : i32
    %48 = vector.broadcast %c3_i32 : i32 to vector<1x128xi32>
    %49 = arith.cmpi eq, %1, %48 : vector<1x128xi32>
    %50 = arith.select %49, %44, %43 : vector<1x128xi1>, vector<1x128xf32>
    %51 = vector.extract_strided_slice %0 {offsets = [4, 0], sizes = [1, 128], strides = [1, 1]} : vector<10x128xf32> to vector<1x128xf32>
    %52 = arith.subf %51, %20 : vector<1x128xf32>
    %53 = math.exp %52 : vector<1x128xf32>
    %54 = arith.addf %47, %53 : vector<1x128xf32>
    %c4_i32 = arith.constant 4 : i32
    %55 = vector.broadcast %c4_i32 : i32 to vector<1x128xi32>
    %56 = arith.cmpi eq, %1, %55 : vector<1x128xi32>
    %57 = arith.select %56, %51, %50 : vector<1x128xi1>, vector<1x128xf32>
    %58 = vector.extract_strided_slice %0 {offsets = [5, 0], sizes = [1, 128], strides = [1, 1]} : vector<10x128xf32> to vector<1x128xf32>
    %59 = arith.subf %58, %20 : vector<1x128xf32>
    %60 = math.exp %59 : vector<1x128xf32>
    %61 = arith.addf %54, %60 : vector<1x128xf32>
    %c5_i32 = arith.constant 5 : i32
    %62 = vector.broadcast %c5_i32 : i32 to vector<1x128xi32>
    %63 = arith.cmpi eq, %1, %62 : vector<1x128xi32>
    %64 = arith.select %63, %58, %57 : vector<1x128xi1>, vector<1x128xf32>
    %65 = vector.extract_strided_slice %0 {offsets = [6, 0], sizes = [1, 128], strides = [1, 1]} : vector<10x128xf32> to vector<1x128xf32>
    %66 = arith.subf %65, %20 : vector<1x128xf32>
    %67 = math.exp %66 : vector<1x128xf32>
    %68 = arith.addf %61, %67 : vector<1x128xf32>
    %c6_i32 = arith.constant 6 : i32
    %69 = vector.broadcast %c6_i32 : i32 to vector<1x128xi32>
    %70 = arith.cmpi eq, %1, %69 : vector<1x128xi32>
    %71 = arith.select %70, %65, %64 : vector<1x128xi1>, vector<1x128xf32>
    %72 = vector.extract_strided_slice %0 {offsets = [7, 0], sizes = [1, 128], strides = [1, 1]} : vector<10x128xf32> to vector<1x128xf32>
    %73 = arith.subf %72, %20 : vector<1x128xf32>
    %74 = math.exp %73 : vector<1x128xf32>
    %75 = arith.addf %68, %74 : vector<1x128xf32>
    %c7_i32 = arith.constant 7 : i32
    %76 = vector.broadcast %c7_i32 : i32 to vector<1x128xi32>
    %77 = arith.cmpi eq, %1, %76 : vector<1x128xi32>
    %78 = arith.select %77, %72, %71 : vector<1x128xi1>, vector<1x128xf32>
    %79 = vector.extract_strided_slice %0 {offsets = [8, 0], sizes = [1, 128], strides = [1, 1]} : vector<10x128xf32> to vector<1x128xf32>
    %80 = arith.subf %79, %20 : vector<1x128xf32>
    %81 = math.exp %80 : vector<1x128xf32>
    %82 = arith.addf %75, %81 : vector<1x128xf32>
    %c8_i32 = arith.constant 8 : i32
    %83 = vector.broadcast %c8_i32 : i32 to vector<1x128xi32>
    %84 = arith.cmpi eq, %1, %83 : vector<1x128xi32>
    %85 = arith.select %84, %79, %78 : vector<1x128xi1>, vector<1x128xf32>
    %86 = vector.extract_strided_slice %0 {offsets = [9, 0], sizes = [1, 128], strides = [1, 1]} : vector<10x128xf32> to vector<1x128xf32>
    %87 = arith.subf %86, %20 : vector<1x128xf32>
    %88 = math.exp %87 : vector<1x128xf32>
    %89 = arith.addf %82, %88 : vector<1x128xf32>
    %c9_i32 = arith.constant 9 : i32
    %90 = vector.broadcast %c9_i32 : i32 to vector<1x128xi32>
    %91 = arith.cmpi eq, %1, %90 : vector<1x128xi32>
    %92 = arith.select %91, %86, %85 : vector<1x128xi1>, vector<1x128xf32>
    %93 = math.log %89 : vector<1x128xf32>
    %94 = arith.addf %93, %20 : vector<1x128xf32>
    %95 = arith.subf %94, %92 : vector<1x128xf32>
    %c0_4 = arith.constant 0 : index
    %c0_5 = arith.constant 0 : index
    %96 = vector.load %arg3[%c0_4, %c0_5] : memref<1x128xf32, #tpu.memory_space<vmem>>, vector<1x128xf32>
    tpu.vector_store %arg3[%c0_4, %c0_5], %95 {strides = array<i32>} : memref<1x128xf32, #tpu.memory_space<vmem>>, vector<1x128xf32>,
    return
  }
  func.func @transform_0(%arg0: i32) -> (i32, i32) {
    %c0_i32 = arith.constant 0 : i32
    %c0_i32_0 = arith.constant 0 : i32
    return %c0_i32, %arg0 : i32, i32
  }
  func.func @transform_1(%arg0: i32) -> (i32, i32) {
    %c0_i32 = arith.constant 0 : i32
    %c0_i32_0 = arith.constant 0 : i32
    return %c0_i32, %arg0 : i32, i32
  }
  func.func @transform_2(%arg0: i32) -> (i32, i32) {
    %c0_i32 = arith.constant 0 : i32
    %c0_i32_0 = arith.constant 0 : i32
    return %c0_i32, %arg0 : i32, i32
  }
}

</mosaic_0001>

<bundles_post_ra>
// kernel: tpu_custom_call.1
= control target key start
LH: loop header
LB: loop body
LE: loop exit
PB: predicated region body
PF: predicated region fallthrough
CT: control target
= control target key end

     0   :  { %7 = vsyncpa [#allocation3], 0  ;;  %s415_s0 = inlined_call_operand.hbm [shape: f32[10,128], index: 0, kind: input, shape index: {}]   ;;  %s416_s1 = inlined_call_operand.hbm [shape: s32[1,128], index: 1, kind: input, shape index: {}]   ;;  %s417_s2 = inlined_call_operand.hbm [shape: f32[1,128], index: 2, kind: output, shape index: {}]  }
   0x1   :  { %8 = vsyncpa [#allocation6], 0 }
   0x2   :  { %9 = vsyncpa [#allocation4], 0  ;;  %s14_s11 = sshll.u32 %s415_s0, 4  ;;  %s331_s12 = smov [#allocation2]   ;;  %s15_s11 = int_to_ptr.hbm [resolvable:$true] %s14_s11 }
   0x3   :  { %s16_s13 = sshll.u32 %s331_s12, 4  ;;  %s28_s16 = sshll.u32 %s416_s1, 4  ;;  %s17_s13 = int_to_ptr.vmem [resolvable:$true] %s16_s13  ;;  %s29_s16 = int_to_ptr.hbm [resolvable:$true] %s28_s16 }
   0x4   :  { %s332_s17 = smov 128   ;;  %s333_s18 = smov 8  }
   0x5   :  { %22 = dma.hbm_to_vmem [thread:$0]  %s15_s11, 256, %s17_s13, [#allocation3], %s332_s17, %s332_s17, %s333_s18  }
   0x6   :  { %s334_s19 = smov [#allocation5]  }
   0x7   :  { %s30_s20 = sshll.u32 %s334_s19, 4  ;;  %s31_s20 = int_to_ptr.vmem [resolvable:$true] %s30_s20 }
   0x8   :  { %33 = dma.hbm_to_vmem [thread:$0]  %s29_s16, 16, %s31_s20, [#allocation6]  }
   0x9   :  { %325 = dma.done.wait [#allocation3], 256  }
   0xa   :  { %326 = vsyncadd [#allocation3], 4294967040 }
   0xb   :  { %327 = dma.done.wait [#allocation6], 16  }
   0xc   :  { %328 = vsyncadd [#allocation6], 4294967280  ;;  %v357_v0 = vld [vmem:[#allocation2] sm:$0xff]  ;;  %v371_v14 = vld [vmem:[#allocation2 + $0x8] sm:$0x3]  ;;  %s335_s0 = smov [#allocation7]  }
   0xd   :  { %89 = vst [vmem:[#allocation1] sm:$0xff] %v357_v0  ;;  %v46_v1 = vrot.slane %v357_v0, 1  ;;  %v49_v2 = vrot.slane %v357_v0, 2  ;;  %v52_v4 = vrot.slane %v357_v0, 3  ;;  %v55_v6 = vrot.slane %v357_v0, 4  ;;  %s213_s1 = sshll.u32 %s335_s0, 4  ;;  %s214_s1 = int_to_ptr.vmem [resolvable:$true] %s213_s1 }
   0xe   :  { %v58_v8 = vrot.slane %v357_v0, 5  ;;  %v61_v11 = vrot.slane %v357_v0, 6  ;;  %v64_v13 = vrot.slane %v357_v0, 7  ;;  %v69_v17 = vrot.slane %v371_v14, 1  ;;  %s215_s23 = sshll.u32 %s417_s2, 4  ;;  %s216_s23 = int_to_ptr.hbm [resolvable:$true] %s215_s23 }
   0xf   :  { %v48_v3 = vmax.f32 %v357_v0, %v46_v1 }
  0x11   :  { %v51_v5 = vmax.f32 %v48_v3, %v49_v2 }
  0x13   :  { %v54_v7 = vmax.f32 %v51_v5, %v52_v4 }
  0x14   :  { %v366_v9 = vld [vmem:[#allocation1 + $0x1] ss:$9 sm:$0xff] }
  0x15   :  { %104 = vst [vmem:[#allocation1] sm:$0xff] %v357_v0  ;;  %v57_v10 = vmax.f32 %v54_v7, %v55_v6 }
  0x17   :  { %v60_v12 = vmax.f32 %v57_v10, %v58_v8  ;;  %v44_v10 = vld [vmem:[#allocation5] sm:$0x1] }
  0x18   :  { %vm76_vm0 = vcmp.eq.s32.totalorder %v44_v10, 0  ;;  %vm88_vm1 = vcmp.eq.s32.totalorder %v44_v10, 1  ;;  %vm103_vm2 = vcmp.eq.s32.totalorder %v44_v10, 2  ;;  %vm118_vm3 = vcmp.eq.s32.totalorder %v44_v10, 3 }
  0x19   :  { %v63_v15 = vmax.f32 %v60_v12, %v61_v11  ;;  %vm133_vm4 = vcmp.eq.s32.totalorder %v44_v10, 4  ;;  %vm148_vm5 = vcmp.eq.s32.totalorder %v44_v10, 5  ;;  %vm163_vm6 = vcmp.eq.s32.totalorder %v44_v10, 6 }
  0x1a   :  { %vm178_vm7 = vcmp.eq.s32.totalorder %v44_v10, 7  ;;  %vm188_vm8 = vcmp.eq.s32.totalorder %v44_v10, 8  ;;  %vm197_vm9 = vcmp.eq.s32.totalorder %v44_v10, 9 }
  0x1b   :  { %v66_v16 = vmax.f32 %v63_v15, %v64_v13 }
  0x1c   :  { %v374_v18 = vld [vmem:[#allocation1 + $0x2] ss:$9 sm:$0xff] }
  0x1d   :  { %119 = vst [vmem:[#allocation1] sm:$0xff] %v357_v0  ;;  %v67_v19 = vmax.f32 %v66_v16, %v371_v14 }
  0x1f   :  { %v378_v20 = vmax.f32 %v67_v19, %v69_v17  ;;  %v77_v19 = vsel %vm76_vm0, %v357_v0, 0.0 }
  0x21   :  { %v72_v21 = vsub.f32 %v357_v0, %v378_v20  ;;  %v79_v22 = vrot.slane %v378_v20, 7  ;;  %v94_v23 = vrot.slane %v378_v20, 6  ;;  %v109_v24 = vrot.slane %v378_v20, 5 }
  0x22   :  { %v124_v25 = vrot.slane %v378_v20, 4  ;;  %v139_v26 = vrot.slane %v378_v20, 3  ;;  %v154_v27 = vrot.slane %v378_v20, 2  ;;  %v169_v28 = vrot.slane %v378_v20, 1 }
  0x23   :  { %v73_v29 = vmul.f32 1.442695, %v72_v21  ;;  %v81_v30 = vsub.f32 %v357_v0, %v79_v22  ;;  %v96_v31 = vsub.f32 %v357_v0, %v94_v23  ;;  %v111_v32 = vsub.f32 %v357_v0, %v109_v24 }
  0x24   :  { %v392_v33 = vld [vmem:[#allocation1 + $0x3] ss:$9 sm:$0xff]  ;;  %v126_v34 = vsub.f32 %v357_v0, %v124_v25  ;;  %v141_v35 = vsub.f32 %v357_v0, %v139_v26  ;;  %v156_v38 = vsub.f32 %v357_v0, %v154_v27  ;;  %v171_v42 = vsub.f32 %v357_v0, %v169_v28 }
  0x25   :  { %134 = vst [vmem:[#allocation1] sm:$0xff] %v357_v0  ;;  %v82_v36 = vmul.f32 1.442695, %v81_v30  ;;  %v97_v37 = vmul.f32 1.442695, %v96_v31  ;;  %231 = vpow2.f32 %v73_v29  ;;  %v190_v45 = vsub.f32 %v371_v14, %v79_v22 }
  0x26   :  { %v112_v39 = vmul.f32 1.442695, %v111_v32  ;;  %v127_v40 = vmul.f32 1.442695, %v126_v34  ;;  %v142_v41 = vmul.f32 1.442695, %v141_v35  ;;  %v184_v49 = vsub.f32 %v371_v14, %v378_v20 }
  0x27   :  { %233 = vpow2.f32 %v82_v36  ;;  %v157_v43 = vmul.f32 1.442695, %v156_v38  ;;  %v172_v44 = vmul.f32 1.442695, %v171_v42  ;;  %v191_v54 = vmul.f32 1.442695, %v190_v45 }
  0x28   :  { %235 = vpow2.f32 %v97_v37  ;;  %v185_v59 = vmul.f32 1.442695, %v184_v49  ;;  %v93_v22 = vsel %vm88_vm1, %v366_v9, %v77_v19 }
  0x29   :  { %237 = vpow2.f32 %v112_v39  ;;  %v108_v24 = vsel %vm103_vm2, %v374_v18, %v93_v22 }
  0x2a   :  { %239 = vpow2.f32 %v127_v40  ;;  %v123_v25 = vsel %vm118_vm3, %v392_v33, %v108_v24 }
  0x2b   :  { %241 = vpow2.f32 %v142_v41  ;;  %v232_v46 = vpop.eup %231 }
  0x2c   :  { %v136_v47 = vld [vmem:[#allocation1 + $0x4] ss:$9 sm:$0xff]  ;;  %243 = vpow2.f32 %v157_v43 }
  0x2d   :  { %v234_v48 = vpop.eup %233  ;;  %149 = vst [vmem:[#allocation1] sm:$0xff] %v357_v0  ;;  %245 = vpow2.f32 %v172_v44  ;;  %v138_v26 = vsel %vm133_vm4, %v136_v47, %v123_v25 }
  0x2e   :  { %v236_v50 = vpop.eup %235  ;;  %v85_v51 = vrot.slane %v234_v48, 1  ;;  %247 = vpow2.f32 %v191_v54 }
  0x2f   :  { %v238_v52 = vpop.eup %237  ;;  %v100_v53 = vrot.slane %v236_v50, 2  ;;  %249 = vpow2.f32 %v185_v59 }
  0x30   :  { %v240_v55 = vpop.eup %239  ;;  %v87_v56 = vadd.f32 %v232_v46, %v85_v51  ;;  %v115_v57 = vrot.slane %v238_v52, 3 }
  0x31   :  { %v242_v58 = vpop.eup %241  ;;  %v130_v61 = vrot.slane %v240_v55, 4 }
  0x32   :  { %v102_v60 = vadd.f32 %v100_v53, %v87_v56  ;;  %v244_v62 = vpop.eup %243  ;;  %v145_v2 = vrot.slane %v242_v58, 5 }
  0x33   :  { %v246_v3 = vpop.eup %245  ;;  %v160_v5 = vrot.slane %v244_v62, 6 }
  0x34   :  { %v151_v63 = vld [vmem:[#allocation1 + $0x5] ss:$9 sm:$0xff]  ;;  %v117_v1 = vadd.f32 %v115_v57, %v102_v60  ;;  %v175_v7 = vrot.slane %v246_v3, 7  ;;  %v248_v8 = vpop.eup %247 }
  0x35   :  { %164 = vst [vmem:[#allocation1] sm:$0xff] %v357_v0  ;;  %v250_v12 = vpop.eup %249  ;;  %v194_v16 = vrot.slane %v248_v8, 1 }
  0x36   :  { %v132_v4 = vadd.f32 %v130_v61, %v117_v1 }
  0x38   :  { %v147_v6 = vadd.f32 %v145_v2, %v132_v4 }
  0x3a   :  { %v162_v11 = vadd.f32 %v160_v5, %v147_v6 }
  0x3c   :  { %v166_v13 = vld [vmem:[#allocation1 + $0x6] ss:$9 sm:$0xff]  ;;  %v177_v15 = vadd.f32 %v175_v7, %v162_v11 }
  0x3d   :  { %179 = vst [vmem:[#allocation1] sm:$0xff] %v357_v0  ;;  %v153_v0 = vsel %vm148_vm5, %v151_v63, %v138_v26 }
  0x3e   :  { %v187_v17 = vadd.f32 %v250_v12, %v177_v15  ;;  %v168_v28 = vsel %vm163_vm6, %v166_v13, %v153_v0 }
  0x40   :  { %v196_v21 = vadd.f32 %v194_v16, %v187_v17 }
  0x42   :  { %251 = vlog2.f32 %v196_v21 }
  0x44   :  { %v181_v23 = vld [vmem:[#allocation1 + $0x7] ss:$9 sm:$0xff] }
  0x45   :  { %198 = vst [vmem:[#allocation1] sm:$0xff] %v371_v14  ;;  %v183_v29 = vsel %vm178_vm7, %v181_v23, %v168_v28 }
  0x46   :  { %v189_v18 = vsel %vm188_vm8, %v371_v14, %v183_v29 }
  0x48   :  { %v252_v27 = vpop.eup %251 }
  0x49   :  { %v204_v30 = vmul.f32 0.6931472, %v252_v27 }
  0x4b   :  { %v205_v9 = vadd.f32 %v204_v30, %v378_v20 }
  0x4c   :  { %v200_v31 = vld [vmem:[#allocation1 + $0x1] ss:$9 sm:$0xff] }
  0x4d   :  { %v202_v32 = vsel %vm197_vm9, %v200_v31, %v189_v18 }
  0x4e   :  { %v206_v33 = vsub.f32 %v205_v9, %v202_v32 }
  0x50   :  { %207 = vst [vmem:[#allocation7] sm:$0x1] %v206_v33 }
  0x51   :  { %218 = dma.vmem_to_hbm [thread:$0]  %s214_s1, 16, %s216_s23, [#allocation4]  }
  0x52   :  { %329 = dma.done.wait [#allocation4], 16  }
  0x53   :  { %330 = vsyncadd [#allocation4], 4294967280 }
  0x54   :  { %223 = vsyncpa [#allocation3], 1 }
  0x55   :  { %224 = vsyncpa [#allocation6], 1 }
  0x56   :  { %225 = vsyncpa [#allocation4], 1 }

</bundles_post_ra>
